<compile_context>
chip_gen: v6e
topology: v6e:2x2x1
jax: 0.10.0
libtpu: 0.0.40
codegen_flags: <defaults>
</compile_context>

<pallas_src>
import jax
import jax.numpy as jnp
import numpy as np
from jax.experimental import pallas as pl
from jax.experimental.pallas import tpu as pltpu

GRID_SIZE = 10
IN_DIM = GRID_SIZE * GRID_SIZE   # 100
HID = 128
N_ACT = 4
HEAD_PAD = 8                     # fused head width: [4 actor | 1 critic | 3 pad]
TB_MAX = 1024                    # batch rows per grid step (multiple of 8 and 128)


def _choose_tb(B):
    # Single block for small/medium batches (block dims == full array dims, so
    # the (8,128) divisibility rule does not apply); TB_MAX-row tiles otherwise
    # (last block may be ragged — its extra rows are discarded on writeback).
    return B if B <= TB_MAX else TB_MAX


def actor_critic_kernel(x_ref, w1_ref, b1_ref, wh_ref, bh_ref, out_ref):
    x = x_ref[...]                                                  # (TB, 100)

    # fc: Linear(100 -> 128) + ReLU  (MXU, f32 accumulation; Mosaic pads K=100)
    h = jnp.dot(x, w1_ref[...], preferred_element_type=jnp.float32) + b1_ref[...]
    h = jnp.maximum(h, 0.0)                                         # (TB, 128)

    # fused heads: one (128, 8) matmul -> lanes 0..3 actor logits, lane 4 critic
    z = jnp.dot(h, wh_ref[...], preferred_element_type=jnp.float32) + bh_ref[...]  # (TB, 8)

    lane = jax.lax.broadcasted_iota(jnp.int32, z.shape, dimension=1)
    is_act = lane < N_ACT

    # masked, max-subtracted softmax over the 4 actor lanes (full 8-lane vreg ops;
    # exp(-inf)=0 keeps pad lanes at zero)
    logits_m = jnp.where(is_act, z, -jnp.inf)
    m = jnp.max(logits_m, axis=-1, keepdims=True)
    e = jnp.exp(logits_m - m)
    s = jnp.sum(e, axis=-1, keepdims=True)
    probs = e * pl.reciprocal(s, approx=False)                      # exact reciprocal

    # combined output: [probs(4) | critic(1) | zeros(3)]
    out = jnp.where(lane == N_ACT, z, probs)
    out_ref[...] = out.astype(out_ref.dtype)


def actor_critic_forward(x, packed_params):
    """x: (B, 100) float32. Returns (actor_probs (B, 4), critic_value (B, 1))."""
    w1, b1, wh, bh = packed_params
    B = x.shape[0]

    TB = _choose_tb(B)
    grid = (pl.cdiv(B, TB),)

    cost = pl.CostEstimate(
        flops=2 * B * (IN_DIM * HID + HID * HEAD_PAD),
        transcendentals=B * N_ACT,
        bytes_accessed=4 * (B * IN_DIM + B * HEAD_PAD
                            + IN_DIM * HID + HID + HID * HEAD_PAD + HEAD_PAD),
    )

    out = pl.pallas_call(
        actor_critic_kernel,
        out_shape=jax.ShapeDtypeStruct((B, HEAD_PAD), jnp.float32),
        grid=grid,
        in_specs=[
            pl.BlockSpec((TB, IN_DIM), lambda i: (i, 0)),       # x: streamed per step
            pl.BlockSpec((IN_DIM, HID), lambda i: (0, 0)),      # W1 (100, 128): VMEM-resident
            pl.BlockSpec((1, HID), lambda i: (0, 0)),           # b1
            pl.BlockSpec((HID, HEAD_PAD), lambda i: (0, 0)),    # fused head weight
            pl.BlockSpec((1, HEAD_PAD), lambda i: (0, 0)),      # fused head bias
        ],
        out_specs=pl.BlockSpec((TB, HEAD_PAD), lambda i: (i, 0)),
        compiler_params=pltpu.CompilerParams(
            dimension_semantics=("parallel",)),
        cost_estimate=cost,
    )(x, w1, b1, wh, bh)

    actor = out[:, :N_ACT]
    critic = out[:, N_ACT:N_ACT + 1]
    return actor, critic


def init_params(key):
    """Deterministic init mimicking PyTorch Linear's U(-1/sqrt(fan_in), 1/sqrt(fan_in)).
    Weights already stored as (in, out)."""
    ks = jax.random.split(key, 6)

    def linear(kw, kb, fan_in, fan_out):
        bound = 1.0 / np.sqrt(fan_in)
        w = jax.random.uniform(kw, (fan_in, fan_out), jnp.float32, -bound, bound)
        b = jax.random.uniform(kb, (1, fan_out), jnp.float32, -bound, bound)
        return w, b

    w1, b1 = linear(ks[0], ks[1], IN_DIM, HID)
    wa, ba = linear(ks[2], ks[3], HID, N_ACT)
    wc, bc = linear(ks[4], ks[5], HID, 1)
    return w1, b1, wa, ba, wc, bc


def pack_params(params):
    """Fuse the actor/critic heads into (128, 8) / (1, 8); W1 stays (100, 128)."""
    w1, b1, wa, ba, wc, bc = params
    pad_w = jnp.zeros((HID, HEAD_PAD - N_ACT - 1), jnp.float32)
    wh = jnp.concatenate([wa, wc, pad_w], axis=1)                           # (128, 8)
    pad_b = jnp.zeros((1, HEAD_PAD - N_ACT - 1), jnp.float32)
    bh = jnp.concatenate([ba, bc, pad_b], axis=1)                           # (1, 8)
    return w1, b1, wh, bh


def reference_forward(x, params):
    w1, b1, wa, ba, wc, bc = params
    h = jnp.maximum(x @ w1 + b1, 0.0)
    logits = h @ wa + ba
    actor = jax.nn.softmax(logits, axis=-1)
    critic = h @ wc + bc
    return actor, critic


if __name__ == "__main__":
    key = jax.random.PRNGKey(0)
    k_x, k_p = jax.random.split(key)

    params = init_params(k_p)
    packed = pack_params(params)

    # small batch (single block, block dims == full array dims)
    B = 8
    x = jax.random.normal(k_x, (B, IN_DIM), dtype=jnp.float32)
    actor_probs, critic_val = jax.block_until_ready(actor_critic_forward(x, packed))
    ref_actor, ref_critic = reference_forward(x, params)
    np.testing.assert_allclose(np.asarray(actor_probs), np.asarray(ref_actor),
                               rtol=1e-5, atol=1e-5)
    np.testing.assert_allclose(np.asarray(critic_val), np.asarray(ref_critic),
                               rtol=1e-5, atol=1e-5)
    assert actor_probs.shape == (B, N_ACT) and critic_val.shape == (B, 1)

    # non-multiple-of-8 batch, still a single (300, 100) block (no padding pass)
    B2 = 300
    x2 = jax.random.normal(jax.random.PRNGKey(1), (B2, IN_DIM), dtype=jnp.float32)
    a2, c2 = jax.block_until_ready(actor_critic_forward(x2, packed))
    ra2, rc2 = reference_forward(x2, params)
    np.testing.assert_allclose(np.asarray(a2), np.asarray(ra2), rtol=1e-5, atol=1e-5)
    np.testing.assert_allclose(np.asarray(c2), np.asarray(rc2), rtol=1e-5, atol=1e-5)
    assert a2.shape == (B2, N_ACT) and c2.shape == (B2, 1)

    # large batch exercising the multi-step grid with a ragged last block
    B3 = 1500
    x3 = jax.random.normal(jax.random.PRNGKey(2), (B3, IN_DIM), dtype=jnp.float32)
    a3, c3 = jax.block_until_ready(actor_critic_forward(x3, packed))
    ra3, rc3 = reference_forward(x3, params)
    np.testing.assert_allclose(np.asarray(a3), np.asarray(ra3), rtol=1e-5, atol=1e-5)
    np.testing.assert_allclose(np.asarray(c3), np.asarray(rc3), rtol=1e-5, atol=1e-5)
    assert a3.shape == (B3, N_ACT) and c3.shape == (B3, 1)

    print("KERNEL_OK")
</pallas_src>

<mosaic_0001>
module attributes {stable_mosaic.version = 11 : i64} {
  func.func @actor_critic_kernel(%arg0: i32, %arg1: memref<8x100xf32, #tpu.memory_space<vmem>>, %arg2: memref<100x128xf32, #tpu.memory_space<vmem>>, %arg3: memref<1x128xf32, #tpu.memory_space<vmem>>, %arg4: memref<128x8xf32, #tpu.memory_space<vmem>>, %arg5: memref<1x8xf32, #tpu.memory_space<vmem>>, %arg6: memref<8x8xf32, #tpu.memory_space<vmem>>) attributes {dimension_semantics = [#tpu.dimension_semantics<parallel>], iteration_bounds = array<i64: 1>, scalar_prefetch = 0 : i64, scratch_operands = 0 : i64, tpu.core_type = #tpu.core_type<tc>, window_params = [{transform_indices = @transform_0, window_bounds = array<i64: 8, 100>}, {pipeline_mode = #tpu.pipeline_mode<synchronous>, transform_indices = @transform_1, window_bounds = array<i64: 100, 128>}, {pipeline_mode = #tpu.pipeline_mode<synchronous>, transform_indices = @transform_2, window_bounds = array<i64: 1, 128>}, {pipeline_mode = #tpu.pipeline_mode<synchronous>, transform_indices = @transform_3, window_bounds = array<i64: 128, 8>}, {pipeline_mode = #tpu.pipeline_mode<synchronous>, transform_indices = @transform_4, window_bounds = array<i64: 1, 8>}, {transform_indices = @transform_5, window_bounds = array<i64: 8, 8>}]} {
    %c0 = arith.constant 0 : index
    %c0_0 = arith.constant 0 : index
    %0 = vector.load %arg1[%c0, %c0_0] : memref<8x100xf32, #tpu.memory_space<vmem>>, vector<8x100xf32>
    %c0_1 = arith.constant 0 : index
    %c0_2 = arith.constant 0 : index
    %1 = vector.load %arg2[%c0_1, %c0_2] : memref<100x128xf32, #tpu.memory_space<vmem>>, vector<100x128xf32>
    %cst = arith.constant dense<0.000000e+00> : vector<8x128xf32>
    %2 = tpu.matmul %0, %1, %cst {dimension_numbers = #tpu.dot_dimension_numbers<[1], [0], [0], [1], [0, 0, 1, 1], [], []>} : vector<8x100xf32>, vector<100x128xf32>, vector<8x128xf32> -> vector<8x128xf32>
    %c0_3 = arith.constant 0 : index
    %c0_4 = arith.constant 0 : index
    %3 = vector.load %arg3[%c0_3, %c0_4] : memref<1x128xf32, #tpu.memory_space<vmem>>, vector<1x128xf32>
    %4 = vector.broadcast %3 : vector<1x128xf32> to vector<8x128xf32>
    %5 = arith.addf %2, %4 : vector<8x128xf32>
    %cst_5 = arith.constant 0.000000e+00 : f32
    %6 = vector.broadcast %cst_5 : f32 to vector<8x128xf32>
    %7 = arith.maximumf %5, %6 : vector<8x128xf32>
    %c0_6 = arith.constant 0 : index
    %c0_7 = arith.constant 0 : index
    %8 = vector.load %arg4[%c0_6, %c0_7] : memref<128x8xf32, #tpu.memory_space<vmem>>, vector<128x8xf32>
    %cst_8 = arith.constant dense<0.000000e+00> : vector<8x8xf32>
    %9 = tpu.matmul %7, %8, %cst_8 {dimension_numbers = #tpu.dot_dimension_numbers<[1], [0], [0], [1], [0, 0, 1, 1], [], []>} : vector<8x128xf32>, vector<128x8xf32>, vector<8x8xf32> -> vector<8x8xf32>
    %c0_9 = arith.constant 0 : index
    %c0_10 = arith.constant 0 : index
    %10 = vector.load %arg5[%c0_9, %c0_10] : memref<1x8xf32, #tpu.memory_space<vmem>>, vector<1x8xf32>
    %11 = vector.broadcast %10 : vector<1x8xf32> to vector<8x8xf32>
    %12 = arith.addf %9, %11 : vector<8x8xf32>
    %13 = tpu.iota {dimensions = array<i32: 1>} : vector<8x8xi32>
    %c4_i32 = arith.constant 4 : i32
    %14 = vector.broadcast %c4_i32 : i32 to vector<8x8xi32>
    %15 = arith.cmpi slt, %13, %14 : vector<8x8xi32>
    %cst_11 = arith.constant 0xFF800000 : f32
    %16 = vector.broadcast %cst_11 : f32 to vector<8x8xf32>
    %17 = arith.select %15, %12, %16 : vector<8x8xi1>, vector<8x8xf32>
    %cst_12 = arith.constant dense<0xFF800000> : vector<8xf32>
    %18 = vector.multi_reduction <maximumf>, %17, %cst_12 [1] : vector<8x8xf32> to vector<8xf32>
    %19 = vector.shape_cast %18 : vector<8xf32> to vector<8x1xf32>
    %20 = vector.broadcast %19 : vector<8x1xf32> to vector<8x8xf32>
    %21 = arith.subf %17, %20 : vector<8x8xf32>
    %22 = math.exp %21 : vector<8x8xf32>
    %cst_13 = arith.constant dense<0.000000e+00> : vector<8xf32>
    %23 = vector.multi_reduction <add>, %22, %cst_13 [1] : vector<8x8xf32> to vector<8xf32>
    %24 = vector.shape_cast %23 : vector<8xf32> to vector<8x1xf32>
    %25 = tpu.reciprocal %24 : vector<8x1xf32> -> vector<8x1xf32>
    %26 = vector.broadcast %25 : vector<8x1xf32> to vector<8x8xf32>
    %27 = arith.mulf %22, %26 : vector<8x8xf32>
    %c4_i32_14 = arith.constant 4 : i32
    %28 = vector.broadcast %c4_i32_14 : i32 to vector<8x8xi32>
    %29 = arith.cmpi eq, %13, %28 : vector<8x8xi32>
    %30 = arith.select %29, %12, %27 : vector<8x8xi1>, vector<8x8xf32>
    %c0_15 = arith.constant 0 : index
    %c0_16 = arith.constant 0 : index
    %31 = vector.load %arg6[%c0_15, %c0_16] : memref<8x8xf32, #tpu.memory_space<vmem>>, vector<8x8xf32>
    tpu.vector_store %arg6[%c0_15, %c0_16], %30 {strides = array<i32>} : memref<8x8xf32, #tpu.memory_space<vmem>>, vector<8x8xf32>,
    return
  }
  func.func @transform_0(%arg0: i32) -> (i32, i32) {
    %c0_i32 = arith.constant 0 : i32
    %c0_i32_0 = arith.constant 0 : i32
    return %arg0, %c0_i32 : i32, i32
  }
  func.func @transform_1(%arg0: i32) -> (i32, i32) {
    %c0_i32 = arith.constant 0 : i32
    %c0_i32_0 = arith.constant 0 : i32
    %c0_i32_1 = arith.constant 0 : i32
    return %c0_i32, %c0_i32_0 : i32, i32
  }
  func.func @transform_2(%arg0: i32) -> (i32, i32) {
    %c0_i32 = arith.constant 0 : i32
    %c0_i32_0 = arith.constant 0 : i32
    %c0_i32_1 = arith.constant 0 : i32
    return %c0_i32, %c0_i32_0 : i32, i32
  }
  func.func @transform_3(%arg0: i32) -> (i32, i32) {
    %c0_i32 = arith.constant 0 : i32
    %c0_i32_0 = arith.constant 0 : i32
    %c0_i32_1 = arith.constant 0 : i32
    return %c0_i32, %c0_i32_0 : i32, i32
  }
  func.func @transform_4(%arg0: i32) -> (i32, i32) {
    %c0_i32 = arith.constant 0 : i32
    %c0_i32_0 = arith.constant 0 : i32
    %c0_i32_1 = arith.constant 0 : i32
    return %c0_i32, %c0_i32_0 : i32, i32
  }
  func.func @transform_5(%arg0: i32) -> (i32, i32) {
    %c0_i32 = arith.constant 0 : i32
    %c0_i32_0 = arith.constant 0 : i32
    return %arg0, %c0_i32 : i32, i32
  }
}

</mosaic_0001>

<bundles_post_ra>
// kernel: tpu_custom_call.1
= control target key start
LH: loop header
LB: loop body
LE: loop exit
PB: predicated region body
PF: predicated region fallthrough
CT: control target
= control target key end

     0   :  { %vm46_vm0 = vcmask 1043456   ;;  %v375_v1 = vmov 0.0   ;;  %vm376_vm1 = vmmov 0   ;;  %s541_s0 = inlined_call_operand.vmem [shape: f32[8,100], index: 0, kind: input, shape index: {}]   ;;  %s542_s1 = inlined_call_operand.vmem [shape: f32[100,128], index: 1, kind: input, shape index: {}]   ;;  %s543_s2 = inlined_call_operand.vmem [shape: f32[1,128], index: 2, kind: input, shape index: {}]   ;;  %s544_s3 = inlined_call_operand.vmem [shape: f32[128,8], index: 3, kind: input, shape index: {}]   ;;  %s545_s4 = inlined_call_operand.vmem [shape: f32[1,8], index: 4, kind: input, shape index: {}]   ;;  %s546_s5 = inlined_call_operand.hbm [shape: f32[8,8], index: 5, kind: output, shape index: {}]  }
   0x1   :  { %v34_v0 = vld [vmem:[%s542_s1 + $0x60] sm:$0xf]  ;;  %282 = vmatprep.subr.mxu0 %v375_v1  ;;  %v33_v2 = vld [vmem:[%s542_s1 + $0x58] sm:$0xff]  ;;  %311 = vmatprep.subr.mxu1 %v375_v1  ;;  %v32_v3 = vld [vmem:[%s542_s1 + $0x50] sm:$0xff] }
   0x2   :  { %283 = vmatpush3.msk.msra.mxu0 %vm46_vm0, %v34_v0  ;;  %308 = vmatprep.mubr.msk.f32.mxu0 %vm376_vm1, %v375_v1  ;;  %v136_v4 = vld [vmem:[%s544_s3 + $0x78] sm:$0xff]  ;;  %v31_v5 = vld [vmem:[%s542_s1 + $0x48] sm:$0xff]  ;;  %v135_v6 = vld [vmem:[%s544_s3 + $0x70] sm:$0xff] }
   0x3   :  { %284 = vmatprep.subr.mxu0 %v375_v1  ;;  %343 = vmatprep.mubr.msk.f32.mxu1 %vm376_vm1, %v375_v1  ;;  %v134_v7 = vld [vmem:[%s544_s3 + $0x68] sm:$0xff]  ;;  %v30_v8 = vld [vmem:[%s542_s1 + $0x40] sm:$0xff]  ;;  %v29_v10 = vld [vmem:[%s542_s1 + $0x38] sm:$0xff] }
   0x4   :  { %285 = vmatpush3.msra.mxu0 %v33_v2  ;;  %312 = vmatpush3.msra.mxu1 %v136_v4  ;;  %v133_v9 = vld [vmem:[%s544_s3 + $0x60] sm:$0xff] }
   0x5   :  { %286 = vmatprep.subr.mxu0 %v375_v1  ;;  %313 = vmatprep.subr.mxu1 %v375_v1 }
   0x6   :  { %287 = vmatpush3.msra.mxu0 %v32_v3  ;;  %314 = vmatpush3.msra.mxu1 %v135_v6 }
   0x7   :  { %288 = vmatprep.subr.mxu0 %v375_v1  ;;  %315 = vmatprep.subr.mxu1 %v375_v1 }
   0x8   :  { %289 = vmatpush3.msra.mxu0 %v31_v5  ;;  %316 = vmatpush3.msra.mxu1 %v134_v7 }
   0x9   :  { %290 = vmatprep.subr.mxu0 %v375_v1 }
   0xa   :  { %10 = vsyncpa [#allocation3], 0  ;;  %291 = vmatpush3.msra.mxu0 %v30_v8  ;;  %317 = vmatprep.subr.mxu1 %v375_v1  ;;  %v132_v11 = vld [vmem:[%s544_s3 + $0x58] sm:$0xff]  ;;  %v28_v12 = vld [vmem:[%s542_s1 + $0x30] sm:$0xff]  ;;  %vm42_vm2 = vcmask 818176   ;;  %v214_v36 = vlaneseq  ;;  %vm218_vm4 = vcmask 64512  }
   0xb   :  { %292 = vmatprep.subr.mxu0 %v375_v1  ;;  %318 = vmatpush3.msra.mxu1 %v133_v9  ;;  %v131_v13 = vld [vmem:[%s544_s3 + $0x50] sm:$0xff]  ;;  %v27_v14 = vld [vmem:[%s542_s1 + $0x28] sm:$0xff]  ;;  %v26_v16 = vld [vmem:[%s542_s1 + $0x20] sm:$0xff] }
   0xc   :  { %293 = vmatpush3.msra.mxu0 %v29_v10  ;;  %319 = vmatprep.subr.mxu1 %v375_v1  ;;  %v130_v15 = vld [vmem:[%s544_s3 + $0x48] sm:$0xff]  ;;  %v129_v17 = vld [vmem:[%s544_s3 + $0x40] sm:$0xff]  ;;  %v25_v18 = vld [vmem:[%s542_s1 + $0x18] sm:$0xff]  ;;  %v215_v37 = vand.u32 127, %v214_v36 }
   0xd   :  { %294 = vmatprep.subr.mxu0 %v375_v1  ;;  %320 = vmatpush3.msra.mxu1 %v132_v11  ;;  %v128_v19 = vld [vmem:[%s544_s3 + $0x38] sm:$0xff]  ;;  %v24_v20 = vld [vmem:[%s542_s1 + $0x10] sm:$0xff]  ;;  %v23_v22 = vld [vmem:[%s542_s1 + $0x8] sm:$0xff] }
   0xe   :  { %295 = vmatpush3.msra.mxu0 %v28_v12  ;;  %321 = vmatprep.subr.mxu1 %v375_v1  ;;  %v127_v21 = vld [vmem:[%s544_s3 + $0x30] sm:$0xff]  ;;  %v126_v23 = vld [vmem:[%s544_s3 + $0x28] sm:$0xff]  ;;  %v22_v24 = vld [vmem:[%s542_s1] sm:$0xff]  ;;  %vm216_vm3 = vcmp.lt.s32.totalorder %v215_v37, 4  ;;  %vm230_vm5 = vcmp.eq.s32.totalorder %v215_v37, 4 }
   0xf   :  { %296 = vmatprep.subr.mxu0 %v375_v1  ;;  %322 = vmatpush3.msra.mxu1 %v131_v13  ;;  %v21_v25 = vld [vmem:[%s541_s0] sm:$0xff]  ;;  %v124_v27 = vld [vmem:[%s544_s3 + $0x18] sm:$0xff]  ;;  %v123_v28 = vld [vmem:[%s544_s3 + $0x10] sm:$0xff] }
  0x10   :  { %297 = vmatpush3.msra.mxu0 %v27_v14  ;;  %323 = vmatprep.subr.mxu1 %v375_v1  ;;  %v125_v26 = vld [vmem:[%s544_s3 + $0x20] sm:$0xff]  ;;  %v122_v29 = vld [vmem:[%s544_s3 + $0x8] sm:$0xff] }
  0x11   :  { %298 = vmatprep.subr.mxu0 %v375_v1  ;;  %324 = vmatpush3.msra.mxu1 %v130_v15  ;;  %v121_v30 = vld [vmem:[%s544_s3] sm:$0xff] }
  0x12   :  { %299 = vmatpush3.msra.mxu0 %v26_v16  ;;  %325 = vmatprep.subr.mxu1 %v375_v1  ;;  %v247_v31 = vld [vmem:[%s543_s2] ss:$0 sm:$0xff]  ;;  %s377_s2 = smov [#allocation2]  }
  0x13   :  { %300 = vmatprep.subr.mxu0 %v375_v1  ;;  %326 = vmatpush3.msra.mxu1 %v129_v17  ;;  %v250_v38 = vld [vmem:[%s545_s4] ss:$0 sm:$0xff]  ;;  %s239_s3 = sshll.u32 %s377_s2, 4  ;;  %s240_s3 = int_to_ptr.vmem [resolvable:$true] %s239_s3 }
  0x14   :  { %301 = vmatpush3.msra.mxu0 %v25_v18  ;;  %327 = vmatprep.subr.mxu1 %v375_v1  ;;  %s353_s4 = scalar_lea.vmem %s240_s3, 128  ;;  %p358_p1 = scmp.lt.s32.totalorder %s240_s3, %s240_s3 }
  0x15   :  { %302 = vmatprep.subr.mxu0 %v375_v1  ;;  %328 = vmatpush3.msra.mxu1 %v128_v19  ;;  %p354_p0 = scmp.ne.s32.totalorder %s240_s3, %s353_s4  ;;  %p359_p2 = scmp.lt.s32.totalorder %s353_s4, %s353_s4 }
  0x16   :  { %303 = vmatpush3.msra.mxu0 %v24_v20  ;;  %329 = vmatprep.subr.mxu1 %v375_v1 }
  0x17   :  { %304 = vmatprep.subr.mxu0 %v375_v1  ;;  %330 = vmatpush3.msra.mxu1 %v127_v21  ;;  %p360_p3 = por %p359_p2, %p358_p1 }
  0x18   :  { %305 = vmatpush3.msra.mxu0 %v23_v22  ;;  %331 = vmatprep.subr.mxu1 %v375_v1 }
  0x19   :  { %306 = vmatprep.subr.mxu0 %v375_v1  ;;  %332 = vmatpush3.msra.mxu1 %v126_v23  ;;  %p361_p4 = pnand %p360_p3, %p354_p0 }
  0x1a   :  { %307 = vmatpush3.msra.mxu0 %v22_v24  ;;  %333 = vmatprep.subr.mxu1 %v375_v1 }
  0x1b   :  { %309 = vmatmul.mubr.msk.f32.vlgmr.msra.gmra.mxu0 %vm42_vm2, %v21_v25  ;;  %334 = vmatpush3.msra.mxu1 %v125_v26 }
  0x1c   :  { %335 = vmatprep.subr.mxu1 %v375_v1 }
  0x1d   :  { %336 = vmatpush3.msra.mxu1 %v124_v27 }
  0x1e   :  { %337 = vmatprep.subr.mxu1 %v375_v1 }
  0x1f   :  { %338 = vmatpush3.msra.mxu1 %v123_v28 }
  0x20   :  { %339 = vmatprep.subr.mxu1 %v375_v1 }
  0x21   :  { %340 = vmatpush3.msra.mxu1 %v122_v29 }
  0x22   :  { %341 = vmatprep.subr.mxu1 %v375_v1 }
  0x23   :  { %342 = vmatpush3.msra.mxu1 %v121_v30 }
  0xdb   :  { %v116_v32 = vpop.f32.mrf.mxu0 }
  0xdc   :  { %v117_v33 = vadd.f32 %v247_v31, %v116_v32 }
  0xdd   :  { %v310_v34 = vpop.f32.mrf.mxu0 }
  0xde   :  { %v120_v35 = vmax.f32 %v117_v33, 0.0 }
  0xe0   :  { %344 = vmatmul.mubr.f32.vlgmr.msra.gmra.mxu1 %v120_v35 }
 0x1a0   :  { %v210_v39 = vpop.f32.mrf.mxu1 }
 0x1a1   :  { %v211_v40 = vadd.f32 %v250_v38, %v210_v39 }
 0x1a2   :  { %v345_v41 = vpop.f32.mrf.mxu1 }
 0x1a3   :  { %v217_v42 = vsel %vm216_vm3, %v211_v40, -inf }
 0x1a4   :  { %v219_v43 = vsel %vm218_vm4, %v217_v42, -inf }
 0x1a5   :  { %220 = vmax.xlane.f32.xlu0 %v219_v43 }
 0x22e   :  { %v221_v44 = vpop.xlane.xlu0 %220 }
 0x22f   :  { %v222_v45 = vsub.f32 %v217_v42, %v221_v44 }
 0x231   :  { %v223_v46 = vmul.f32 1.442695, %v222_v45 }
 0x233   :  { %349 = vpow2.f32 %v223_v46 }
 0x240   :  { %v350_v47 = vpop.eup %349 }
 0x241   :  { %v225_v48 = vsel %vm218_vm4, %v350_v47, 0.0 }
 0x242   :  { %226 = vadd.xlane.f32.xlu0 %v225_v48 }
 0x2cb   :  { %v227_v49 = vpop.xlane.xlu0 %226 }
 0x2cc   :  { %351 = vrcp.f32 %v227_v49 }
 0x2d9   :  { %v352_v50 = vpop.eup %351 }
 0x2da   :  { %v229_v51 = vmul.f32 %v352_v50, %v350_v47 }
 0x2dc   :  { %v231_v52 = vsel %vm230_vm5, %v211_v40, %v229_v51 }
 0x2dd   :  { %232 = vst.msk [vmem:[#allocation2] sm:$0xff] %vm218_vm4, %v231_v52 }
 0x2de   :  { %364 = shalt.err (!%p361_p4)
}
 0x2df   :  { %242 = dma.vmem_to_hbm [thread:$0]  %s240_s3, 128, %s546_s5, [#allocation3]  }
 0x2e0   :  { %373 = dma.done.wait [#allocation3], 128  }
 0x2e1   :  { %374 = vsyncadd [#allocation3], 4294967168 }
 0x2e2   :  { %246 = vsyncpa [#allocation3], 1 }

</bundles_post_ra>
